<compile_context>
chip_gen: v5e
topology: v5e:2x2
jax: 0.10.0
libtpu: 0.0.40
codegen_flags: <defaults>
</compile_context>

<pallas_src>
import functools

import jax
import jax.numpy as jnp
from jax.experimental import pallas as pl
from jax.experimental.pallas import tpu as pltpu


def ann_kernel(
    x_ref,                 # (4,  tm)  f32   (batch on lanes)
    w1_ref, b1_ref,        # (48, 4)  bf16, (48, 1) f32
    w2_ref, b2_ref,        # (24, 48) bf16, (24, 1) f32
    w3_ref, b3_ref,        # (16, 24) bf16, (16, 1) f32
    w4_ref, b4_ref,        # (3,  16) bf16, (3,  1) f32
    out_ref,               # (3,  tm) f32
):
    mxu_dtype = w1_ref.dtype
    x = x_ref[...].astype(mxu_dtype)

    h = jnp.dot(w1_ref[...], x, preferred_element_type=jnp.float32) + b1_ref[...]
    h = jnp.maximum(h, 0.0)                                      # (48, tm) f32

    h = jnp.dot(w2_ref[...], h.astype(mxu_dtype),
                preferred_element_type=jnp.float32) + b2_ref[...]
    h = jnp.maximum(h, 0.0)                                      # (24, tm) f32

    h = jnp.dot(w3_ref[...], h.astype(mxu_dtype),
                preferred_element_type=jnp.float32) + b3_ref[...]
    h = jnp.maximum(h, 0.0)                                      # (16, tm) f32

    logits = jnp.dot(w4_ref[...], h.astype(mxu_dtype),
                     preferred_element_type=jnp.float32) + b4_ref[...]  # (3, tm)

    # Numerically stable softmax over the class axis (axis 0 here).
    # Exact divide so rows sum to 1 to f32 precision.
    m = jnp.max(logits, axis=0, keepdims=True)                   # (1, tm)
    e = jnp.exp(logits - m)
    denom = jnp.sum(e, axis=0, keepdims=True)                    # (1, tm)
    out_ref[...] = (e / denom).astype(out_ref.dtype)


def init_params(key):
    """Deterministic parameter init matching the PyTorch module's shapes."""
    def linear(key, fan_in, fan_out):
        kw, kb = jax.random.split(key)
        bound = 1.0 / jnp.sqrt(fan_in)
        w = jax.random.uniform(kw, (fan_in, fan_out), jnp.float32, -bound, bound)
        b = jax.random.uniform(kb, (1, fan_out), jnp.float32, -bound, bound)
        return w, b

    keys = jax.random.split(key, 6)
    wl1, bl1 = linear(keys[0], 4, 16)    # left:  4 -> 16
    wl2, bl2 = linear(keys[1], 16, 8)    # left: 16 -> 8
    wr1, br1 = linear(keys[2], 4, 32)    # right: 4 -> 32
    wr2, br2 = linear(keys[3], 32, 16)   # right: 32 -> 16
    wo1, bo1 = linear(keys[4], 24, 16)   # out1: (8+16) -> 16
    wo2, bo2 = linear(keys[5], 16, 3)    # out2: 16 -> 3
    return dict(
        wl1=wl1, bl1=bl1, wl2=wl2, bl2=bl2,
        wr1=wr1, br1=br1, wr2=wr2, br2=br2,
        wo1=wo1, bo1=bo1, wo2=wo2, bo2=bo2,
    )


def pack_params(params, mxu_dtype=jnp.bfloat16):
    """Host-side packing: fuse left/right branches, transpose to (out, in).

    Dropout layers are identity at inference and are omitted. Weights are
    narrowed for the MXU (bf16 by default on v5e/v6e/v7x); biases stay f32 on
    the elementwise path.
    """
    # Layer 1: [left | right] concat on the output dim.
    w1 = jnp.concatenate([params["wl1"], params["wr1"]], axis=1).T        # (48, 4)
    b1 = jnp.concatenate([params["bl1"], params["br1"]], axis=1).T        # (48, 1)

    # Layer 2: block-diagonal combination of the two branch matmuls.
    w2 = jnp.zeros((48, 24), jnp.float32)
    w2 = w2.at[:16, :8].set(params["wl2"]).at[16:, 8:].set(params["wr2"])
    w2 = w2.T                                                             # (24, 48)
    b2 = jnp.concatenate([params["bl2"], params["br2"]], axis=1).T        # (24, 1)

    w3 = params["wo1"].T                                                  # (16, 24)
    b3 = params["bo1"].T                                                  # (16, 1)
    w4 = params["wo2"].T                                                  # (3, 16)
    b4 = params["bo2"].T                                                  # (3, 1)

    return dict(
        w1=w1.astype(mxu_dtype), b1=b1,
        w2=w2.astype(mxu_dtype), b2=b2,
        w3=w3.astype(mxu_dtype), b3=b3,
        w4=w4.astype(mxu_dtype), b4=b4,
    )


def _round_up(n, m):
    return ((n + m - 1) // m) * m


def _x_map(i):
    return (0, i)


def _const_map(i):
    return (0, 0)


@functools.partial(jax.jit, static_argnames=("tile_m",))
def ann_forward(x, packed, *, tile_m=4096):
    """Batched forward pass. x: (B, 4) f32, returns (B, 3) f32 softmax probs."""
    B = x.shape[0]
    lane = 128
    min_steps = 2  # >=2 grid steps so v7x's two TensorCores both get work.
    # Largest lane-multiple tile that (a) caps at tile_m, (b) keeps >=min_steps
    # grid steps for large batches, (c) bounds tail padding to < one tile.
    target = -(-B // min_steps)
    tm = min(tile_m, _round_up(max(target, 1), lane))
    padded_b = _round_up(B, tm)

    # Batch-on-lanes layout: (4, B), padded on the lane axis.
    xt = x.T
    if padded_b != B:
        xt = jnp.pad(xt, ((0, 0), (0, padded_b - B)))

    weight_args = (
        packed["w1"], packed["b1"], packed["w2"], packed["b2"],
        packed["w3"], packed["b3"], packed["w4"], packed["b4"],
    )
    in_specs = [pl.BlockSpec((4, tm), _x_map)]
    # Full-array blocks with constant index maps -> weights/biases stay
    # VMEM-resident across grid steps (DMA'd once).
    in_specs += [pl.BlockSpec(a.shape, _const_map) for a in weight_args]

    out_t = pl.pallas_call(
        ann_kernel,
        out_shape=jax.ShapeDtypeStruct((3, padded_b), jnp.float32),
        grid=(padded_b // tm,),
        in_specs=in_specs,
        out_specs=pl.BlockSpec((3, tm), _x_map),
        compiler_params=pltpu.CompilerParams(
            dimension_semantics=("parallel",)),
    )(xt, *weight_args)

    return out_t[:, :B].T


def ann_forward_ref(x, params):
    """Pure-JAX f32 reference (un-packed weights) for correctness checking."""
    l = jnp.maximum(x @ params["wl1"] + params["bl1"], 0.0)
    l = jnp.maximum(l @ params["wl2"] + params["bl2"], 0.0)
    r = jnp.maximum(x @ params["wr1"] + params["br1"], 0.0)
    r = jnp.maximum(r @ params["wr2"] + params["br2"], 0.0)
    cat = jnp.concatenate([l, r], axis=1)
    h = jnp.maximum(cat @ params["wo1"] + params["bo1"], 0.0)
    logits = h @ params["wo2"] + params["bo2"]
    return jax.nn.softmax(logits, axis=1)


if __name__ == "__main__":
    key = jax.random.PRNGKey(0)
    k_params, k_x1, k_x2 = jax.random.split(key, 3)
    params = init_params(k_params)
    packed = pack_params(params, mxu_dtype=jnp.bfloat16)

    # Small, aligned-ish batch (rounds up to a single 128-lane tile).
    B = 8
    x = jax.random.normal(k_x1, (B, 4), jnp.float32)
    out = jax.block_until_ready(ann_forward(x, packed))
    ref = ann_forward_ref(x, params)
    assert out.shape == (B, 3)
    # bf16 MXU operands (f32 accumulation) -> loose tolerance vs f32 reference.
    assert jnp.allclose(out, ref, atol=3e-2, rtol=3e-2), "mismatch vs reference (B=8)"
    # Exact-divide softmax: rows sum to 1 to f32 precision.
    assert jnp.allclose(jnp.sum(out, axis=1), 1.0, atol=1e-5), "softmax rows must sum to 1"

    # Non-multiple-of-tile batch exercises lane padding + a 2-step grid.
    B2 = 133
    x2 = jax.random.normal(k_x2, (B2, 4), jnp.float32)
    out2 = jax.block_until_ready(ann_forward(x2, packed))
    ref2 = ann_forward_ref(x2, params)
    assert out2.shape == (B2, 3)
    assert jnp.allclose(out2, ref2, atol=3e-2, rtol=3e-2), "mismatch vs reference (B=133)"
    assert jnp.allclose(jnp.sum(out2, axis=1), 1.0, atol=1e-5), "softmax rows must sum to 1"

    print("KERNEL_OK")
</pallas_src>

<mosaic_0001>
module attributes {stable_mosaic.version = 11 : i64} {
  func.func @ann_kernel(%arg0: i32, %arg1: memref<4x128xf32, #tpu.memory_space<vmem>>, %arg2: memref<48x4xbf16, #tpu.memory_space<vmem>>, %arg3: memref<48x1xf32, #tpu.memory_space<vmem>>, %arg4: memref<24x48xbf16, #tpu.memory_space<vmem>>, %arg5: memref<24x1xf32, #tpu.memory_space<vmem>>, %arg6: memref<16x24xbf16, #tpu.memory_space<vmem>>, %arg7: memref<16x1xf32, #tpu.memory_space<vmem>>, %arg8: memref<3x16xbf16, #tpu.memory_space<vmem>>, %arg9: memref<3x1xf32, #tpu.memory_space<vmem>>, %arg10: memref<3x128xf32, #tpu.memory_space<vmem>>) attributes {dimension_semantics = [#tpu.dimension_semantics<parallel>], iteration_bounds = array<i64: 1>, scalar_prefetch = 0 : i64, scratch_operands = 0 : i64, tpu.core_type = #tpu.core_type<tc>, window_params = [{transform_indices = @transform_0, window_bounds = array<i64: 4, 128>}, {pipeline_mode = #tpu.pipeline_mode<synchronous>, transform_indices = @transform_1, window_bounds = array<i64: 48, 4>}, {pipeline_mode = #tpu.pipeline_mode<synchronous>, transform_indices = @transform_2, window_bounds = array<i64: 48, 1>}, {pipeline_mode = #tpu.pipeline_mode<synchronous>, transform_indices = @transform_3, window_bounds = array<i64: 24, 48>}, {pipeline_mode = #tpu.pipeline_mode<synchronous>, transform_indices = @transform_4, window_bounds = array<i64: 24, 1>}, {pipeline_mode = #tpu.pipeline_mode<synchronous>, transform_indices = @transform_5, window_bounds = array<i64: 16, 24>}, {pipeline_mode = #tpu.pipeline_mode<synchronous>, transform_indices = @transform_6, window_bounds = array<i64: 16, 1>}, {pipeline_mode = #tpu.pipeline_mode<synchronous>, transform_indices = @transform_7, window_bounds = array<i64: 3, 16>}, {pipeline_mode = #tpu.pipeline_mode<synchronous>, transform_indices = @transform_8, window_bounds = array<i64: 3, 1>}, {transform_indices = @transform_9, window_bounds = array<i64: 3, 128>}]} {
    %c0 = arith.constant 0 : index
    %c0_0 = arith.constant 0 : index
    %0 = vector.load %arg1[%c0, %c0_0] : memref<4x128xf32, #tpu.memory_space<vmem>>, vector<4x128xf32>
    %1 = arith.truncf %0 : vector<4x128xf32> to vector<4x128xbf16>
    %c0_1 = arith.constant 0 : index
    %c0_2 = arith.constant 0 : index
    %2 = vector.load %arg2[%c0_1, %c0_2] : memref<48x4xbf16, #tpu.memory_space<vmem>>, vector<48x4xbf16>
    %cst = arith.constant dense<0.000000e+00> : vector<48x128xf32>
    %3 = tpu.matmul %2, %1, %cst {dimension_numbers = #tpu.dot_dimension_numbers<[1], [0], [0], [1], [0, 0, 1, 1], [], []>} : vector<48x4xbf16>, vector<4x128xbf16>, vector<48x128xf32> -> vector<48x128xf32>
    %c0_3 = arith.constant 0 : index
    %c0_4 = arith.constant 0 : index
    %4 = vector.load %arg3[%c0_3, %c0_4] : memref<48x1xf32, #tpu.memory_space<vmem>>, vector<48x1xf32>
    %5 = vector.broadcast %4 : vector<48x1xf32> to vector<48x128xf32>
    %6 = arith.addf %3, %5 : vector<48x128xf32>
    %cst_5 = arith.constant 0.000000e+00 : f32
    %7 = vector.broadcast %cst_5 : f32 to vector<48x128xf32>
    %8 = arith.maximumf %6, %7 : vector<48x128xf32>
    %c0_6 = arith.constant 0 : index
    %c0_7 = arith.constant 0 : index
    %9 = vector.load %arg4[%c0_6, %c0_7] : memref<24x48xbf16, #tpu.memory_space<vmem>>, vector<24x48xbf16>
    %10 = arith.truncf %8 : vector<48x128xf32> to vector<48x128xbf16>
    %cst_8 = arith.constant dense<0.000000e+00> : vector<24x128xf32>
    %11 = tpu.matmul %9, %10, %cst_8 {dimension_numbers = #tpu.dot_dimension_numbers<[1], [0], [0], [1], [0, 0, 1, 1], [], []>} : vector<24x48xbf16>, vector<48x128xbf16>, vector<24x128xf32> -> vector<24x128xf32>
    %c0_9 = arith.constant 0 : index
    %c0_10 = arith.constant 0 : index
    %12 = vector.load %arg5[%c0_9, %c0_10] : memref<24x1xf32, #tpu.memory_space<vmem>>, vector<24x1xf32>
    %13 = vector.broadcast %12 : vector<24x1xf32> to vector<24x128xf32>
    %14 = arith.addf %11, %13 : vector<24x128xf32>
    %cst_11 = arith.constant 0.000000e+00 : f32
    %15 = vector.broadcast %cst_11 : f32 to vector<24x128xf32>
    %16 = arith.maximumf %14, %15 : vector<24x128xf32>
    %c0_12 = arith.constant 0 : index
    %c0_13 = arith.constant 0 : index
    %17 = vector.load %arg6[%c0_12, %c0_13] : memref<16x24xbf16, #tpu.memory_space<vmem>>, vector<16x24xbf16>
    %18 = arith.truncf %16 : vector<24x128xf32> to vector<24x128xbf16>
    %cst_14 = arith.constant dense<0.000000e+00> : vector<16x128xf32>
    %19 = tpu.matmul %17, %18, %cst_14 {dimension_numbers = #tpu.dot_dimension_numbers<[1], [0], [0], [1], [0, 0, 1, 1], [], []>} : vector<16x24xbf16>, vector<24x128xbf16>, vector<16x128xf32> -> vector<16x128xf32>
    %c0_15 = arith.constant 0 : index
    %c0_16 = arith.constant 0 : index
    %20 = vector.load %arg7[%c0_15, %c0_16] : memref<16x1xf32, #tpu.memory_space<vmem>>, vector<16x1xf32>
    %21 = vector.broadcast %20 : vector<16x1xf32> to vector<16x128xf32>
    %22 = arith.addf %19, %21 : vector<16x128xf32>
    %cst_17 = arith.constant 0.000000e+00 : f32
    %23 = vector.broadcast %cst_17 : f32 to vector<16x128xf32>
    %24 = arith.maximumf %22, %23 : vector<16x128xf32>
    %c0_18 = arith.constant 0 : index
    %c0_19 = arith.constant 0 : index
    %25 = vector.load %arg8[%c0_18, %c0_19] : memref<3x16xbf16, #tpu.memory_space<vmem>>, vector<3x16xbf16>
    %26 = arith.truncf %24 : vector<16x128xf32> to vector<16x128xbf16>
    %cst_20 = arith.constant dense<0.000000e+00> : vector<3x128xf32>
    %27 = tpu.matmul %25, %26, %cst_20 {dimension_numbers = #tpu.dot_dimension_numbers<[1], [0], [0], [1], [0, 0, 1, 1], [], []>} : vector<3x16xbf16>, vector<16x128xbf16>, vector<3x128xf32> -> vector<3x128xf32>
    %c0_21 = arith.constant 0 : index
    %c0_22 = arith.constant 0 : index
    %28 = vector.load %arg9[%c0_21, %c0_22] : memref<3x1xf32, #tpu.memory_space<vmem>>, vector<3x1xf32>
    %29 = vector.broadcast %28 : vector<3x1xf32> to vector<3x128xf32>
    %30 = arith.addf %27, %29 : vector<3x128xf32>
    %cst_23 = arith.constant dense<0xFF800000> : vector<128xf32>
    %31 = vector.multi_reduction <maximumf>, %30, %cst_23 [0] : vector<3x128xf32> to vector<128xf32>
    %32 = vector.shape_cast %31 : vector<128xf32> to vector<1x128xf32>
    %33 = vector.broadcast %32 : vector<1x128xf32> to vector<3x128xf32>
    %34 = arith.subf %30, %33 : vector<3x128xf32>
    %35 = math.exp %34 : vector<3x128xf32>
    %cst_24 = arith.constant dense<0.000000e+00> : vector<128xf32>
    %36 = vector.multi_reduction <add>, %35, %cst_24 [0] : vector<3x128xf32> to vector<128xf32>
    %37 = vector.shape_cast %36 : vector<128xf32> to vector<1x128xf32>
    %38 = vector.broadcast %37 : vector<1x128xf32> to vector<3x128xf32>
    %39 = arith.divf %35, %38 : vector<3x128xf32>
    %c0_25 = arith.constant 0 : index
    %c0_26 = arith.constant 0 : index
    %40 = vector.load %arg10[%c0_25, %c0_26] : memref<3x128xf32, #tpu.memory_space<vmem>>, vector<3x128xf32>
    tpu.vector_store %arg10[%c0_25, %c0_26], %39 {strides = array<i32>} : memref<3x128xf32, #tpu.memory_space<vmem>>, vector<3x128xf32>,
    return
  }
  func.func @transform_0(%arg0: i32) -> (i32, i32) {
    %c0_i32 = arith.constant 0 : i32
    %c0_i32_0 = arith.constant 0 : i32
    return %c0_i32, %arg0 : i32, i32
  }
  func.func @transform_1(%arg0: i32) -> (i32, i32) {
    %c0_i32 = arith.constant 0 : i32
    %c0_i32_0 = arith.constant 0 : i32
    %c0_i32_1 = arith.constant 0 : i32
    return %c0_i32, %c0_i32_0 : i32, i32
  }
  func.func @transform_2(%arg0: i32) -> (i32, i32) {
    %c0_i32 = arith.constant 0 : i32
    %c0_i32_0 = arith.constant 0 : i32
    %c0_i32_1 = arith.constant 0 : i32
    return %c0_i32, %c0_i32_0 : i32, i32
  }
  func.func @transform_3(%arg0: i32) -> (i32, i32) {
    %c0_i32 = arith.constant 0 : i32
    %c0_i32_0 = arith.constant 0 : i32
    %c0_i32_1 = arith.constant 0 : i32
    return %c0_i32, %c0_i32_0 : i32, i32
  }
  func.func @transform_4(%arg0: i32) -> (i32, i32) {
    %c0_i32 = arith.constant 0 : i32
    %c0_i32_0 = arith.constant 0 : i32
    %c0_i32_1 = arith.constant 0 : i32
    return %c0_i32, %c0_i32_0 : i32, i32
  }
  func.func @transform_5(%arg0: i32) -> (i32, i32) {
    %c0_i32 = arith.constant 0 : i32
    %c0_i32_0 = arith.constant 0 : i32
    %c0_i32_1 = arith.constant 0 : i32
    return %c0_i32, %c0_i32_0 : i32, i32
  }
  func.func @transform_6(%arg0: i32) -> (i32, i32) {
    %c0_i32 = arith.constant 0 : i32
    %c0_i32_0 = arith.constant 0 : i32
    %c0_i32_1 = arith.constant 0 : i32
    return %c0_i32, %c0_i32_0 : i32, i32
  }
  func.func @transform_7(%arg0: i32) -> (i32, i32) {
    %c0_i32 = arith.constant 0 : i32
    %c0_i32_0 = arith.constant 0 : i32
    %c0_i32_1 = arith.constant 0 : i32
    return %c0_i32, %c0_i32_0 : i32, i32
  }
  func.func @transform_8(%arg0: i32) -> (i32, i32) {
    %c0_i32 = arith.constant 0 : i32
    %c0_i32_0 = arith.constant 0 : i32
    %c0_i32_1 = arith.constant 0 : i32
    return %c0_i32, %c0_i32_0 : i32, i32
  }
  func.func @transform_9(%arg0: i32) -> (i32, i32) {
    %c0_i32 = arith.constant 0 : i32
    %c0_i32_0 = arith.constant 0 : i32
    return %c0_i32, %arg0 : i32, i32
  }
}

</mosaic_0001>

<bundles_post_ra>
// kernel: ann_forward.1
= control target key start
LH: loop header
LB: loop body
LE: loop exit
PB: predicated region body
PF: predicated region fallthrough
CT: control target
= control target key end

     0   :  { %vm102_vm0 = vcmask 1041408   ;;  %v345_v1 = vmov 0   ;;  %vm92_vm1 = vcmask 31744   ;;  %vm168_vm2 = vcmask 392192   ;;  %s462_s0 = inlined_call_operand.vmem [shape: f32[4,128], index: 0, kind: input, shape index: {}]   ;;  %s463_s2 = inlined_call_operand.vmem [shape: f32[48,1], index: 2, kind: input, shape index: {}]   ;;  %s464_s1 = inlined_call_operand.vmem [shape: bf16[48,4], index: 1, kind: input, shape index: {}]   ;;  %s465_s4 = inlined_call_operand.vmem [shape: f32[24,1], index: 4, kind: input, shape index: {}]   ;;  %s466_s6 = inlined_call_operand.vmem [shape: f32[16,1], index: 6, kind: input, shape index: {}]   ;;  %s467_s8 = inlined_call_operand.vmem [shape: f32[3,1], index: 8, kind: input, shape index: {}]   ;;  %s468_s3 = inlined_call_operand.vmem [shape: bf16[24,48], index: 3, kind: input, shape index: {}]   ;;  %s469_s5 = inlined_call_operand.vmem [shape: bf16[16,24], index: 5, kind: input, shape index: {}]   ;;  %s470_s7 = inlined_call_operand.vmem [shape: bf16[3,16], index: 7, kind: input, shape index: {}]   ;;  %s471_s9 = inlined_call_operand.vmem [shape: f32[3,128], index: 9, kind: output, shape index: {}]  }
   0x1   :  { %v33_v0 = vld [vmem:[%s462_s0] sm:$0xf]  ;;  %338 = vset.pattern.permute.xlu0 %v345_v1  ;;  %339 = vset.pattern.permute.xlu1 %v345_v1  ;;  %v43_v4 = vld [vmem:[%s463_s2 + $0x10] sm:$0xff]  ;;  %v46_v9 = vld [vmem:[%s463_s2 + $0x28] sm:$0xff]  ;;  %vm221_vm3 = vcmask 1043456   ;;  %vm217_vm4 = vcmask 195584  }
   0x2   :  { %v45_v2 = vld [vmem:[%s463_s2 + $0x20] sm:$0xff]  ;;  %v34_v3 = vpack.c.bf16 %v33_v0, %v33_v0  ;;  %340 = vset.pattern.permute.xlu2 %v345_v1  ;;  %59 = vperm.xlu1 %339, %v43_v4   ;;  %v333_v7 = vld [vmem:[%s464_s1 + $0x10] sm:$0xff]  ;;  %v44_v10 = vld [vmem:[%s463_s2 + $0x18] sm:$0xff]  ;;  %vm249_vm5 = vcmask 130048   ;;  %vm266_vm6 = vcmask 1042432  }
   0x3   :  { %69 = vperm.xlu0 %338, %v45_v2   ;;  %v331_v6 = vld [vmem:[%s464_s1] sm:$0xff]  ;;  %v42_v11 = vld [vmem:[%s463_s2 + $0x8] sm:$0xff]  ;;  %v144_v12 = vld [vmem:[%s465_s4 + $0x10] sm:$0xff] }
   0x4   :  { %v104_v5 = vsel %vm102_vm0, %v34_v3, 0  ;;  %v41_v8 = vld [vmem:[%s463_s2] sm:$0xff]  ;;  %v143_v14 = vld [vmem:[%s465_s4 + $0x8] sm:$0xff] }
   0x5   :  { %113 = vmatpush.bf16.msra.mxu0 %v104_v5  ;;  %336 = vmatpush.bf16.msra.mxu3 %v104_v5  ;;  %v142_v13 = vld [vmem:[%s465_s4] sm:$0xff]  ;;  %v332_v15 = vld [vmem:[%s464_s1 + $0x8] sm:$0xff] }
   0x6   :  { %49 = vperm.xlu2 %340, %v41_v8   ;;  %v200_v16 = vld [vmem:[%s466_s6] sm:$0xff]  ;;  %v201_v17 = vld [vmem:[%s466_s6 + $0x8] sm:$0xff] }
   0x7   :  { %v243_v18 = vld [vmem:[%s467_s8] sm:$0x7]  ;;  %v138_v47 = vld [vmem:[%s468_s3 + $0x8] sm:$0xf] }
   0x8   :  { %316 = vmatmul.msk.bf16.vlgmr.msra.gmra.mxu0 %vm92_vm1, %v331_v6  ;;  %318 = vmatmul.msk.bf16.vlgmr.msra.gmra.mxu3 %vm92_vm1, %v333_v7  ;;  %v334_v46 = vld [vmem:[%s468_s3] sm:$0xff]  ;;  %v165_v48 = vunpack.c.l.b16 %v138_v47 }
   0x9   :  { %v335_v2 = vld [vmem:[%s469_s5] sm:$0xff] }
   0xa   :  { %64 = vperm.xlu1 %339, %v44_v10   ;;  %v167_v49 = vpack.c.b16 %v165_v48, %v165_v48 }
   0xb   :  { %74 = vperm.xlu0 %338, %v46_v9  }
   0xe   :  { %54 = vperm.xlu2 %340, %v42_v11  }
  0x12   :  { %147 = vperm.xlu1 %339, %v142_v13  }
  0x13   :  { %157 = vperm.xlu0 %338, %v144_v12   ;;  %v241_v12 = vld [vmem:[%s470_s7] sm:$0x3] }
  0x16   :  { %152 = vperm.xlu2 %340, %v143_v14  }
  0x18   :  { %317 = vmatmul.msk.bf16.gmra.mxu0 %vm92_vm1, %v332_v15 }
  0x1a   :  { %209 = vperm.xlu1 %339, %v201_v17  }
  0x1b   :  { %204 = vperm.xlu0 %338, %v200_v16  }
  0x1e   :  { %246 = vperm.xlu2 %340, %v243_v18  }
  0x60   :  { %v50_v24 = vpop.permute.xlu2 %49 }
  0x68   :  { %v55_v33 = vpop.permute.xlu2 %54 }
  0x70   :  { %v153_v54 = vpop.permute.xlu2 %152 }
  0x74   :  { %v60_v23 = vpop.permute.xlu1 %59 }
  0x75   :  { %v70_v20 = vpop.permute.xlu0 %69 }
  0x78   :  { %v247_v13 = vpop.permute.xlu2 %246 }
  0x7c   :  { %v65_v35 = vpop.permute.xlu1 %64 }
  0x7d   :  { %v75_v26 = vpop.permute.xlu0 %74 }
  0x84   :  { %v148_v57 = vpop.permute.xlu1 %147 }
  0x85   :  { %v115_v19 = vpop.f32.mrf.mxu0  ;;  %v158_v52 = vpop.permute.xlu0 %157 }
  0x86   :  { %v116_v39 = vadd.f32 %v115_v19, %v50_v24 }
  0x88   :  { %v130_v44 = vmax.f32 %v116_v39, 0.0 }
  0x8b   :  { %v125_v21 = vpop.f32.mrf.mxu3 }
  0x8c   :  { %v126_v25 = vadd.f32 %v125_v21, %v70_v20  ;;  %v210_v6 = vpop.permute.xlu1 %209 }
  0x8d   :  { %v117_v22 = vpop.f32.mrf.mxu0  ;;  %v205_v4 = vpop.permute.xlu0 %204 }
  0x8e   :  { %v134_v30 = vmax.f32 %v126_v25, 0.0  ;;  %v118_v37 = vadd.f32 %v117_v22, %v55_v33 }
  0x90   :  { %v131_v42 = vmax.f32 %v118_v37, 0.0 }
  0x92   :  { %v139_v45 = vpack.c.bf16 %v131_v42, %v130_v44 }
  0x93   :  { %v127_v27 = vpop.f32.mrf.mxu3 }
  0x94   :  { %v128_v28 = vadd.f32 %v127_v27, %v75_v26 }
  0x95   :  { %v120_v29 = vpop.f32.mrf.mxu0 }
  0x96   :  { %v135_v31 = vmax.f32 %v128_v28, 0.0  ;;  %v121_v34 = vadd.f32 %v120_v29, %v60_v23 }
  0x98   :  { %v141_v32 = vpack.c.bf16 %v135_v31, %v134_v30  ;;  %v132_v40 = vmax.f32 %v121_v34, 0.0 }
  0x9a   :  { %180 = vmatpush.bf16.msra.mxu1 %v141_v32 }
  0x9d   :  { %v122_v36 = vpop.f32.mrf.mxu0 }
  0x9e   :  { %v123_v38 = vadd.f32 %v122_v36, %v65_v35 }
  0xa0   :  { %v133_v41 = vmax.f32 %v123_v38, 0.0 }
  0xa2   :  { %v140_v43 = vpack.c.bf16 %v133_v41, %v132_v40 }
  0xa4   :  { %181 = vmatpush.bf16.msra.mxu1 %v140_v43 }
  0xa8   :  { %182 = vmatpush.bf16.msra.mxu1 %v139_v45 }
  0xab   :  { %323 = vmatmul.msk.bf16.vlgmr.msra.gmra.mxu1 %vm168_vm2, %v334_v46 }
  0xbb   :  { %324 = vmatmul.msk.bf16.gmra.mxu1 %vm168_vm2, %v167_v49 }
 0x128   :  { %v184_v50 = vpop.f32.mrf.mxu1 }
 0x129   :  { %v185_v59 = vadd.f32 %v184_v50, %v148_v57 }
 0x12b   :  { %v193_v63 = vmax.f32 %v185_v59, 0.0 }
 0x130   :  { %v186_v51 = vpop.f32.mrf.mxu1 }
 0x131   :  { %v187_v56 = vadd.f32 %v186_v51, %v153_v54 }
 0x133   :  { %v194_v61 = vmax.f32 %v187_v56, 0.0 }
 0x135   :  { %v198_v1 = vpack.c.bf16 %v194_v61, %v193_v63 }
 0x138   :  { %v189_v53 = vpop.f32.mrf.mxu1 }
 0x139   :  { %v190_v55 = vadd.f32 %v189_v53, %v158_v52 }
 0x13b   :  { %v195_v58 = vmax.f32 %v190_v55, 0.0 }
 0x13d   :  { %v199_v60 = vpack.c.bf16 %v195_v58, %v195_v58 }
 0x13f   :  { %v223_v62 = vsel %vm221_vm3, %v199_v60, 0 }
 0x140   :  { %v191_v0 = vpop.f32.mrf.mxu1  ;;  %231 = vmatpush.bf16.msra.mxu2 %v223_v62 }
 0x144   :  { %232 = vmatpush.bf16.msra.mxu2 %v198_v1 }
 0x147   :  { %329 = vmatmul.msk.bf16.vlgmr.msra.gmra.mxu2 %vm217_vm4, %v335_v2 }
 0x1ca   :  { %v234_v3 = vpop.f32.mrf.mxu2 }
 0x1cb   :  { %v235_v5 = vadd.f32 %v234_v3, %v205_v4 }
 0x1cd   :  { %v239_v9 = vmax.f32 %v235_v5, 0.0 }
 0x1d2   :  { %v236_v7 = vpop.f32.mrf.mxu2 }
 0x1d3   :  { %v237_v8 = vadd.f32 %v236_v7, %v210_v6 }
 0x1d5   :  { %v240_v10 = vmax.f32 %v237_v8, 0.0 }
 0x1d7   :  { %v242_v11 = vpack.c.bf16 %v240_v10, %v239_v9 }
 0x1d9   :  { %260 = vmatpush.bf16.msrb.mxu3 %v242_v11 }
 0x1dc   :  { %330 = vmatmul.msk.bf16.vlgmr.msrb.gmra.mxu3 %vm249_vm5, %v241_v12 }
 0x25f   :  { %v262_v14 = vpop.f32.mrf.mxu3 }
 0x260   :  { %v263_v15 = vadd.f32 %v262_v14, %v247_v13 }
 0x262   :  { %v267_v16 = vsel %vm266_vm6, %v263_v15, -inf }
 0x263   :  { %v268_v17 = vrot.slane %v267_v16, 4 }
 0x265   :  { %v269_v18 = vmax.f32 %v267_v16, %v268_v17 }
 0x267   :  { %v270_v19 = vrot.slane %v269_v18, 2  ;;  %v264_v20 = vpop.f32.mrf.mxu3 }
 0x269   :  { %v271_v21 = vmax.f32 %v269_v18, %v270_v19 }
 0x26b   :  { %v272_v22 = vrot.slane %v271_v21, 1 }
 0x26d   :  { %v273_v23 = vmax.f32 %v271_v21, %v272_v22 }
 0x26f   :  { %v274_v24 = vsub.f32 %v263_v15, %v273_v23 }
 0x271   :  { %v275_v25 = vmul.f32 1.442695, %v274_v24 }
 0x273   :  { %341 = vpow2.f32 %v275_v25 }
 0x279   :  { %v342_v26 = vpop.eup %341 }
 0x27a   :  { %v277_v27 = vsel %vm266_vm6, %v342_v26, 0.0 }
 0x27b   :  { %v278_v28 = vrot.slane %v277_v27, 4 }
 0x27d   :  { %v279_v29 = vadd.f32 %v278_v28, %v277_v27 }
 0x27f   :  { %v280_v30 = vrot.slane %v279_v29, 2 }
 0x281   :  { %v281_v31 = vadd.f32 %v280_v30, %v279_v29 }
 0x283   :  { %v282_v32 = vrot.slane %v281_v31, 1 }
 0x285   :  { %v283_v33 = vadd.f32 %v282_v32, %v281_v31 }
 0x287   :  { %343 = vrcp.f32 %v283_v33  ;;  %v295_v37 = vand.u32 2147483648, %v283_v33  ;;  %v293_v39 = vand.u32 2147483647, %v283_v33  ;;  %vm289_vm8 = vweird.f32 %v283_v33 }
 0x289   :  { %v296_v41 = vor.u32 1.1754944e-38, %v295_v37  ;;  %vm294_vm10 = vcmp.eq.f32.partialorder %v293_v39, 8.507059e+37 }
 0x28d   :  { %v344_v34 = vpop.eup %343 }
 0x28e   :  { %v285_v35 = vmul.f32 %v344_v34, %v283_v33  ;;  %vm290_vm7 = vweird.f32 %v344_v34 }
 0x28f   :  { %vm291_vm9 = vmor %vm289_vm8, %vm290_vm7 }
 0x290   :  { %v286_v36 = vsub.f32 1.0, %v285_v35 }
 0x292   :  { %v287_v38 = vmul.f32 %v344_v34, %v286_v36 }
 0x294   :  { %v288_v40 = vadd.f32 %v344_v34, %v287_v38 }
 0x296   :  { %v292_v42 = vsel %vm291_vm9, %v344_v34, %v288_v40 }
 0x297   :  { %v297_v43 = vsel %vm294_vm10, %v296_v41, %v292_v42 }
 0x298   :  { %v298_v44 = vmul.f32 %v342_v26, %v297_v43 }
 0x29a   :  { %299 = vst [vmem:[%s471_s9] sm:$0x7] %v298_v44 }

</bundles_post_ra>
